<compile_context>
chip_gen: v7x
topology: tpu7x:2x2x1
jax: 0.10.0
libtpu: 0.0.40
codegen_flags: <defaults>
</compile_context>

<pallas_src>
from functools import partial

import jax
import jax.numpy as jnp
from jax.experimental import pallas as pl
from jax.experimental.pallas import tpu as pltpu


HEAD_PAD = 128  # lane-dense fused head width (act_dim + 1 real cols, rest zeros)


def policy_kernel(x_ref, w1_ref, b1_ref, w2_ref, b2_ref, wh_ref, bh_ref, out_ref):
    # Shared trunk: Linear -> ReLU -> Linear -> ReLU.
    # bf16 operands into the MXU, f32 accumulation; bias/ReLU on the f32 acc.
    x = x_ref[...]                                              # bf16 (tb, obs)
    h = jnp.dot(x, w1_ref[...], preferred_element_type=jnp.float32) + b1_ref[...]
    h = jnp.maximum(h, 0.0).astype(jnp.bfloat16)
    h = jnp.dot(h, w2_ref[...], preferred_element_type=jnp.float32) + b2_ref[...]
    h = jnp.maximum(h, 0.0).astype(jnp.bfloat16)
    # Fused mean+value head: one matmul into a 128-lane output slab, bf16 store.
    out = jnp.dot(h, wh_ref[...], preferred_element_type=jnp.float32) + bh_ref[...]
    out_ref[...] = out.astype(out_ref.dtype)


def prepare_params(params):
    """One-time parameter prep (fused head weight/bias, dtype casts, std)."""
    (w1, b1, w2, b2, wm, bm, wv, bv, log_std) = params
    act_dim = wm.shape[1]
    head_w = act_dim + 1
    assert head_w <= HEAD_PAD, "act_dim + 1 must fit in the 128-lane head slab"
    # Fused, lane-dense head weight/bias: [wm | wv | zeros] -> (h2, 128)
    wh = jnp.pad(jnp.concatenate([wm, wv], axis=1),
                 ((0, 0), (0, HEAD_PAD - head_w)))
    bh = jnp.pad(jnp.concatenate([bm.reshape(1, -1), bv.reshape(1, -1)], axis=1),
                 ((0, 0), (0, HEAD_PAD - head_w)))
    prepped = (
        w1.astype(jnp.bfloat16), b1.reshape(1, -1).astype(jnp.float32),
        w2.astype(jnp.bfloat16), b2.reshape(1, -1).astype(jnp.float32),
        wh.astype(jnp.bfloat16), bh.astype(jnp.float32),
        jnp.exp(log_std).astype(jnp.float32),   # std is batch-independent
    )
    return prepped, act_dim


@partial(jax.jit, static_argnames=("act_dim", "tile_b"))
def continuous_policy_forward(x, prepped, act_dim, tile_b=512):
    (w1, b1, w2, b2, wh, bh, std) = prepped
    B, obs_dim = x.shape
    h1 = w1.shape[1]
    h2 = w2.shape[1]

    # Batch tile: large (>=512) to amortize per-grid-step overhead, but clamped
    # to the (8-rounded) batch for tiny inputs so we don't pad 8 rows to 512.
    tb = min(tile_b, max(8, ((B + 7) // 8) * 8))
    num_tiles = pl.cdiv(B, tb)
    Bp = num_tiles * tb
    # Pad batch + cast to bf16 inside the jit (fuses; padded rows sliced off).
    xp = jnp.pad(x, ((0, Bp - B), (0, 0))).astype(jnp.bfloat16)

    const2d = lambda i: (0, 0)  # weights/biases: same block every step -> VMEM-resident

    out = pl.pallas_call(
        policy_kernel,
        out_shape=jax.ShapeDtypeStruct((Bp, HEAD_PAD), jnp.bfloat16),
        grid_spec=pltpu.PrefetchScalarGridSpec(
            num_scalar_prefetch=0,
            grid=(num_tiles,),
            in_specs=[
                pl.BlockSpec((tb, obs_dim), lambda i: (i, 0)),   # x tile (bf16)
                pl.BlockSpec((obs_dim, h1), const2d),            # w1 (bf16)
                pl.BlockSpec((1, h1), const2d),                  # b1 (f32)
                pl.BlockSpec((h1, h2), const2d),                 # w2 (bf16)
                pl.BlockSpec((1, h2), const2d),                  # b2 (f32)
                pl.BlockSpec((h2, HEAD_PAD), const2d),           # fused head W (bf16)
                pl.BlockSpec((1, HEAD_PAD), const2d),            # fused head b (f32)
            ],
            out_specs=pl.BlockSpec((tb, HEAD_PAD), lambda i: (i, 0)),
        ),
        compiler_params=pltpu.CompilerParams(
            dimension_semantics=("parallel",)),  # batch tiles shard across TCs (v7x)
    )(xp, w1, b1, w2, b2, wh, bh)

    mean = out[:B, :act_dim].astype(jnp.float32)
    value = out[:B, act_dim].astype(jnp.float32)
    return mean, std, value


def init_params(key, obs_dim, act_dim, hidden_sizes=(128, 128)):
    """Deterministic synthetic parameters (not a checkpoint load)."""
    keys = jax.random.split(key, 8)
    h1, h2 = hidden_sizes
    scale = 0.05
    w1 = scale * jax.random.normal(keys[0], (obs_dim, h1), jnp.float32)
    b1 = scale * jax.random.normal(keys[1], (1, h1), jnp.float32)
    w2 = scale * jax.random.normal(keys[2], (h1, h2), jnp.float32)
    b2 = scale * jax.random.normal(keys[3], (1, h2), jnp.float32)
    wm = scale * jax.random.normal(keys[4], (h2, act_dim), jnp.float32)
    bm = scale * jax.random.normal(keys[5], (act_dim,), jnp.float32)
    wv = scale * jax.random.normal(keys[6], (h2, 1), jnp.float32)
    bv = scale * jax.random.normal(keys[7], (1,), jnp.float32)
    log_std = jnp.zeros((act_dim,), jnp.float32)  # nn.Parameter(torch.zeros(act_dim))
    return (w1, b1, w2, b2, wm, bm, wv, bv, log_std)


def reference_forward(x, params):
    (w1, b1, w2, b2, wm, bm, wv, bv, log_std) = params
    h = jnp.maximum(x @ w1 + b1, 0.0)
    h = jnp.maximum(h @ w2 + b2, 0.0)
    mean = h @ wm + bm
    std = jnp.exp(log_std)
    value = (h @ wv + bv)[:, 0]
    return mean, std, value


if __name__ == "__main__":
    B, obs_dim, act_dim = 8, 32, 8
    key = jax.random.PRNGKey(0)
    k_x, k_p = jax.random.split(key)
    x = jax.random.normal(k_x, (B, obs_dim), jnp.float32)
    params = init_params(k_p, obs_dim, act_dim)

    prepped, ad = prepare_params(params)   # one-time param prep (reused per call)
    mean, std, value = jax.block_until_ready(
        continuous_policy_forward(x, prepped, act_dim=ad))

    # Sanity-check against a pure-JAX f32 reference (bf16 operands/output ->
    # looser tolerances than the all-f32 version).
    ref_mean, ref_std, ref_value = reference_forward(x, params)
    assert mean.shape == (B, act_dim) and std.shape == (act_dim,) and value.shape == (B,)
    assert jnp.allclose(mean, ref_mean, atol=5e-2, rtol=5e-2)
    assert jnp.allclose(std, ref_std, atol=1e-6)
    assert jnp.allclose(value, ref_value, atol=5e-2, rtol=5e-2)

    print("KERNEL_OK")
</pallas_src>

<mosaic_0001>
module attributes {stable_mosaic.version = 11 : i64} {
  func.func @policy_kernel(%arg0: i32, %arg1: memref<8x32xbf16, #tpu.memory_space<vmem>>, %arg2: memref<32x128xbf16, #tpu.memory_space<vmem>>, %arg3: memref<1x128xf32, #tpu.memory_space<vmem>>, %arg4: memref<128x128xbf16, #tpu.memory_space<vmem>>, %arg5: memref<1x128xf32, #tpu.memory_space<vmem>>, %arg6: memref<128x128xbf16, #tpu.memory_space<vmem>>, %arg7: memref<1x128xf32, #tpu.memory_space<vmem>>, %arg8: memref<8x128xbf16, #tpu.memory_space<vmem>>) attributes {dimension_semantics = [#tpu.dimension_semantics<parallel>], iteration_bounds = array<i64: 1>, scalar_prefetch = 0 : i64, scratch_operands = 0 : i64, tpu.core_type = #tpu.core_type<tc>, window_params = [{transform_indices = @transform_0, window_bounds = array<i64: 8, 32>}, {pipeline_mode = #tpu.pipeline_mode<synchronous>, transform_indices = @transform_1, window_bounds = array<i64: 32, 128>}, {pipeline_mode = #tpu.pipeline_mode<synchronous>, transform_indices = @transform_2, window_bounds = array<i64: 1, 128>}, {pipeline_mode = #tpu.pipeline_mode<synchronous>, transform_indices = @transform_3, window_bounds = array<i64: 128, 128>}, {pipeline_mode = #tpu.pipeline_mode<synchronous>, transform_indices = @transform_4, window_bounds = array<i64: 1, 128>}, {pipeline_mode = #tpu.pipeline_mode<synchronous>, transform_indices = @transform_5, window_bounds = array<i64: 128, 128>}, {pipeline_mode = #tpu.pipeline_mode<synchronous>, transform_indices = @transform_6, window_bounds = array<i64: 1, 128>}, {transform_indices = @transform_7, window_bounds = array<i64: 8, 128>}]} {
    %c0 = arith.constant 0 : index
    %c0_0 = arith.constant 0 : index
    %0 = vector.load %arg1[%c0, %c0_0] : memref<8x32xbf16, #tpu.memory_space<vmem>>, vector<8x32xbf16>
    %c0_1 = arith.constant 0 : index
    %c0_2 = arith.constant 0 : index
    %1 = vector.load %arg2[%c0_1, %c0_2] : memref<32x128xbf16, #tpu.memory_space<vmem>>, vector<32x128xbf16>
    %cst = arith.constant dense<0.000000e+00> : vector<8x128xf32>
    %2 = tpu.matmul %0, %1, %cst {dimension_numbers = #tpu.dot_dimension_numbers<[1], [0], [0], [1], [0, 0, 1, 1], [], []>} : vector<8x32xbf16>, vector<32x128xbf16>, vector<8x128xf32> -> vector<8x128xf32>
    %c0_3 = arith.constant 0 : index
    %c0_4 = arith.constant 0 : index
    %3 = vector.load %arg3[%c0_3, %c0_4] : memref<1x128xf32, #tpu.memory_space<vmem>>, vector<1x128xf32>
    %4 = vector.broadcast %3 : vector<1x128xf32> to vector<8x128xf32>
    %5 = arith.addf %2, %4 : vector<8x128xf32>
    %cst_5 = arith.constant 0.000000e+00 : f32
    %6 = vector.broadcast %cst_5 : f32 to vector<8x128xf32>
    %7 = arith.maximumf %5, %6 : vector<8x128xf32>
    %8 = arith.truncf %7 : vector<8x128xf32> to vector<8x128xbf16>
    %c0_6 = arith.constant 0 : index
    %c0_7 = arith.constant 0 : index
    %9 = vector.load %arg4[%c0_6, %c0_7] : memref<128x128xbf16, #tpu.memory_space<vmem>>, vector<128x128xbf16>
    %cst_8 = arith.constant dense<0.000000e+00> : vector<8x128xf32>
    %10 = tpu.matmul %8, %9, %cst_8 {dimension_numbers = #tpu.dot_dimension_numbers<[1], [0], [0], [1], [0, 0, 1, 1], [], []>} : vector<8x128xbf16>, vector<128x128xbf16>, vector<8x128xf32> -> vector<8x128xf32>
    %c0_9 = arith.constant 0 : index
    %c0_10 = arith.constant 0 : index
    %11 = vector.load %arg5[%c0_9, %c0_10] : memref<1x128xf32, #tpu.memory_space<vmem>>, vector<1x128xf32>
    %12 = vector.broadcast %11 : vector<1x128xf32> to vector<8x128xf32>
    %13 = arith.addf %10, %12 : vector<8x128xf32>
    %cst_11 = arith.constant 0.000000e+00 : f32
    %14 = vector.broadcast %cst_11 : f32 to vector<8x128xf32>
    %15 = arith.maximumf %13, %14 : vector<8x128xf32>
    %16 = arith.truncf %15 : vector<8x128xf32> to vector<8x128xbf16>
    %c0_12 = arith.constant 0 : index
    %c0_13 = arith.constant 0 : index
    %17 = vector.load %arg6[%c0_12, %c0_13] : memref<128x128xbf16, #tpu.memory_space<vmem>>, vector<128x128xbf16>
    %cst_14 = arith.constant dense<0.000000e+00> : vector<8x128xf32>
    %18 = tpu.matmul %16, %17, %cst_14 {dimension_numbers = #tpu.dot_dimension_numbers<[1], [0], [0], [1], [0, 0, 1, 1], [], []>} : vector<8x128xbf16>, vector<128x128xbf16>, vector<8x128xf32> -> vector<8x128xf32>
    %c0_15 = arith.constant 0 : index
    %c0_16 = arith.constant 0 : index
    %19 = vector.load %arg7[%c0_15, %c0_16] : memref<1x128xf32, #tpu.memory_space<vmem>>, vector<1x128xf32>
    %20 = vector.broadcast %19 : vector<1x128xf32> to vector<8x128xf32>
    %21 = arith.addf %18, %20 : vector<8x128xf32>
    %22 = arith.truncf %21 : vector<8x128xf32> to vector<8x128xbf16>
    %c0_17 = arith.constant 0 : index
    %c0_18 = arith.constant 0 : index
    %23 = vector.load %arg8[%c0_17, %c0_18] : memref<8x128xbf16, #tpu.memory_space<vmem>>, vector<8x128xbf16>
    tpu.vector_store %arg8[%c0_17, %c0_18], %22 {strides = array<i32>} : memref<8x128xbf16, #tpu.memory_space<vmem>>, vector<8x128xbf16>,
    return
  }
  func.func @transform_0(%arg0: i32) -> (i32, i32) {
    %c0_i32 = arith.constant 0 : i32
    %c0_i32_0 = arith.constant 0 : i32
    return %arg0, %c0_i32 : i32, i32
  }
  func.func @transform_1(%arg0: i32) -> (i32, i32) {
    %c0_i32 = arith.constant 0 : i32
    %c0_i32_0 = arith.constant 0 : i32
    %c0_i32_1 = arith.constant 0 : i32
    return %c0_i32, %c0_i32_0 : i32, i32
  }
  func.func @transform_2(%arg0: i32) -> (i32, i32) {
    %c0_i32 = arith.constant 0 : i32
    %c0_i32_0 = arith.constant 0 : i32
    %c0_i32_1 = arith.constant 0 : i32
    return %c0_i32, %c0_i32_0 : i32, i32
  }
  func.func @transform_3(%arg0: i32) -> (i32, i32) {
    %c0_i32 = arith.constant 0 : i32
    %c0_i32_0 = arith.constant 0 : i32
    %c0_i32_1 = arith.constant 0 : i32
    return %c0_i32, %c0_i32_0 : i32, i32
  }
  func.func @transform_4(%arg0: i32) -> (i32, i32) {
    %c0_i32 = arith.constant 0 : i32
    %c0_i32_0 = arith.constant 0 : i32
    %c0_i32_1 = arith.constant 0 : i32
    return %c0_i32, %c0_i32_0 : i32, i32
  }
  func.func @transform_5(%arg0: i32) -> (i32, i32) {
    %c0_i32 = arith.constant 0 : i32
    %c0_i32_0 = arith.constant 0 : i32
    %c0_i32_1 = arith.constant 0 : i32
    return %c0_i32, %c0_i32_0 : i32, i32
  }
  func.func @transform_6(%arg0: i32) -> (i32, i32) {
    %c0_i32 = arith.constant 0 : i32
    %c0_i32_0 = arith.constant 0 : i32
    %c0_i32_1 = arith.constant 0 : i32
    return %c0_i32, %c0_i32_0 : i32, i32
  }
  func.func @transform_7(%arg0: i32) -> (i32, i32) {
    %c0_i32 = arith.constant 0 : i32
    %c0_i32_0 = arith.constant 0 : i32
    return %arg0, %c0_i32 : i32, i32
  }
}

</mosaic_0001>

<bundles_post_ra>
// kernel: continuous_policy_forward.1
= control target key start
LH: loop header
LB: loop body
LE: loop exit
PB: predicated region body
PF: predicated region fallthrough
CT: control target
= control target key end

     0   :  { %12 = vsyncpa [#allocation3], 0  ;;  %s635_s0 = inlined_call_operand.vmem [shape: bf16[8,32], index: 0, kind: input, shape index: {}]   ;;  %s636_s1 = inlined_call_operand.vmem [shape: bf16[32,128], index: 1, kind: input, shape index: {}]   ;;  %s637_s2 = inlined_call_operand.vmem [shape: f32[1,128], index: 2, kind: input, shape index: {}]   ;;  %s638_s3 = inlined_call_operand.hbm [shape: bf16[128,128], index: 3, kind: input, shape index: {}]   ;;  %s639_s4 = inlined_call_operand.vmem [shape: f32[1,128], index: 4, kind: input, shape index: {}]   ;;  %s640_s5 = inlined_call_operand.hbm [shape: bf16[128,128], index: 5, kind: input, shape index: {}]   ;;  %s641_s6 = inlined_call_operand.vmem [shape: f32[1,128], index: 6, kind: input, shape index: {}]   ;;  %s642_s7 = inlined_call_operand.vmem [shape: bf16[8,128], index: 7, kind: output, shape index: {}]  }
   0x1   :  { %13 = vsyncpa [#allocation5], 0  ;;  %s520_s24 = smov [#allocation2]   ;;  %s472_s28 = scalar_lea.hbm %s638_s3, 1024 }
   0x2   :  { %s25_s25 = sshll.u32 %s520_s24, 4  ;;  %p473_p0 = scmp.ne.s32.totalorder %s638_s3, %s472_s28  ;;  %s26_s25 = int_to_ptr.vmem [resolvable:$true] %s25_s25 }
   0x3   :  { %p476_p1 = scmp.lt.u32.totalorder %s472_s28, %s638_s3 }
   0x5   :  { %p478_p2 = pnand %p476_p1, %p473_p0 }
   0x7   :  { %481 = shalt.err (!%p478_p2)
}
   0x8   :  { %s482_s10 = scalar_lea.vmem %s26_s25, 1024  ;;  %p487_p4 = scmp.lt.s32.totalorder %s26_s25, %s26_s25 }
   0x9   :  { %p483_p3 = scmp.ne.s32.totalorder %s26_s25, %s482_s10  ;;  %p488_p5 = scmp.lt.s32.totalorder %s482_s10, %s482_s10 }
   0xb   :  { %p489_p6 = por %p488_p5, %p487_p4 }
   0xd   :  { %p490_p7 = pnand %p489_p6, %p483_p3 }
   0xf   :  { %493 = shalt.err (!%p490_p7)
}
  0x10   :  { %s521_s11 = smov 64   ;;  %s522_s12 = smov 4  }
  0x11   :  { %31 = dma.hbm_to_vmem [thread:$0]  %s638_s3, 1024, %s26_s25, [#allocation3], %s521_s11, %s521_s11, %s522_s12  }
  0x12   :  { %s523_s15 = smov [#allocation4]   ;;  %s494_s19 = scalar_lea.hbm %s640_s5, 1024 }
  0x13   :  { %s39_s16 = sshll.u32 %s523_s15, 4  ;;  %p495_p8 = scmp.ne.s32.totalorder %s640_s5, %s494_s19  ;;  %s40_s16 = int_to_ptr.vmem [resolvable:$true] %s39_s16 }
  0x14   :  { %p498_p9 = scmp.lt.u32.totalorder %s494_s19, %s640_s5 }
  0x16   :  { %p500_p10 = pnand %p498_p9, %p495_p8 }
  0x18   :  { %503 = shalt.err (!%p500_p10)
}
  0x19   :  { %s504_s24 = scalar_lea.vmem %s40_s16, 1024  ;;  %p509_p12 = scmp.lt.s32.totalorder %s40_s16, %s40_s16 }
  0x1a   :  { %p505_p11 = scmp.ne.s32.totalorder %s40_s16, %s504_s24  ;;  %p510_p13 = scmp.lt.s32.totalorder %s504_s24, %s504_s24 }
  0x1c   :  { %p511_p0 = por %p510_p13, %p509_p12 }
  0x1e   :  { %p512_p1 = pnand %p511_p0, %p505_p11 }
  0x20   :  { %515 = shalt.err (!%p512_p1)
}
  0x21   :  { %45 = dma.hbm_to_vmem [thread:$0]  %s640_s5, 1024, %s40_s16, [#allocation5], %s521_s11, %s521_s11, %s522_s12  }
  0x22   :  { %516 = dma.done.wait [#allocation3], 1024  }
  0x23   :  { %517 = vsyncadd [#allocation3], 4294966272 }
  0x24   :  { %518 = dma.done.wait [#allocation5], 1024  }
  0x25   :  { %519 = vsyncadd [#allocation5], 4294966272  ;;  %v524_v0 = vmov 0.0   ;;  %vm525_vm0 = vmmov 0   ;;  %v454_v1 = vld [vmem:[%s636_s1] sm:$0xff]   ;;  %v455_v2 = vld [vmem:[%s636_s1 + $0x8] sm:$0xff]  }
  0x26   :  { %400 = vmatprep.subr.bf16.mxu0 %v524_v0  ;;  %404 = vmatprep.mubr.msk.bf16.mxu0 %vm525_vm0, %v524_v0  ;;  %v456_v3 = vld [vmem:[#allocation2] sm:$0xff]   ;;  %vm79_vm1 = vcmask 261120   ;;  %v457_v4 = vld [vmem:[#allocation2 + $0x8] sm:$0xff]   ;;  %v458_v6 = vld [vmem:[#allocation2 + $0x10] sm:$0xff]  }
  0x27   :  { %408 = vmatprep.subr.bf16.mxu1 %v524_v0  ;;  %424 = vmatprep.mubr.msk.bf16.mxu1 %vm525_vm0, %v524_v0  ;;  %v55_v5 = vld [vmem:[%s635_s0] sm:$0xf]  ;;  %v459_v7 = vld [vmem:[#allocation2 + $0x18] sm:$0xff]   ;;  %v461_v9 = vld [vmem:[#allocation2 + $0x28] sm:$0xff]  }
  0x28   :  { %401 = vmatpush3.bf16.msra.mxu0 %v454_v1  ;;  %409 = vmatpush3.bf16.msra.mxu1 %v456_v3  ;;  %v460_v8 = vld [vmem:[#allocation2 + $0x20] sm:$0xff]   ;;  %v462_v10 = vld [vmem:[#allocation2 + $0x30] sm:$0xff]   ;;  %v463_v11 = vld [vmem:[#allocation2 + $0x38] sm:$0xff]  }
  0x29   :  { %402 = vmatprep.subr.bf16.mxu0 %v524_v0  ;;  %410 = vmatprep.subr.bf16.mxu1 %v524_v0  ;;  %v464_v12 = vld [vmem:[#allocation4] sm:$0xff]   ;;  %v465_v13 = vld [vmem:[#allocation4 + $0x8] sm:$0xff]   ;;  %v466_v14 = vld [vmem:[#allocation4 + $0x10] sm:$0xff]  }
  0x2a   :  { %v467_v15 = vld [vmem:[#allocation4 + $0x18] sm:$0xff]   ;;  %v468_v16 = vld [vmem:[#allocation4 + $0x20] sm:$0xff]   ;;  %v469_v17 = vld [vmem:[#allocation4 + $0x28] sm:$0xff]  }
  0x2b   :  { %v357_v18 = vld [vmem:[%s637_s2] ss:$0 sm:$0xff]  ;;  %v470_v26 = vld [vmem:[#allocation4 + $0x30] sm:$0xff]   ;;  %v471_v27 = vld [vmem:[#allocation4 + $0x38] sm:$0xff]  }
  0x2c   :  { %403 = vmatpush3.bf16.msra.mxu0 %v455_v2  ;;  %411 = vmatpush3.bf16.msra.mxu1 %v457_v4  ;;  %v361_v28 = vld [vmem:[%s639_s4] ss:$0 sm:$0xff] }
  0x2d   :  { %428 = vmatprep.subr.bf16.mxu0 %v524_v0  ;;  %412 = vmatprep.subr.bf16.mxu1 %v524_v0  ;;  %v370_v36 = vld [vmem:[%s641_s6] ss:$0 sm:$0xff] }
  0x2f   :  { %405 = vmatmul.mubr.msk.bf16.vlgmr.msra.gmra.mrb[0].mxu0 %vm79_vm1, %v55_v5 }
  0x30   :  { %444 = vmatprep.mubr.msk.bf16.mxu0 %vm525_vm0, %v524_v0  ;;  %413 = vmatpush3.bf16.msra.mxu1 %v458_v6 }
  0x31   :  { %414 = vmatprep.subr.bf16.mxu1 %v524_v0  ;;  %429 = vmatpush3.bf16.msra.mxu0 %v464_v12 }
  0x32   :  { %430 = vmatprep.subr.bf16.mxu0 %v524_v0 }
  0x34   :  { %415 = vmatpush3.bf16.msra.mxu1 %v459_v7 }
  0x35   :  { %416 = vmatprep.subr.bf16.mxu1 %v524_v0  ;;  %431 = vmatpush3.bf16.msra.mxu0 %v465_v13 }
  0x36   :  { %432 = vmatprep.subr.bf16.mxu0 %v524_v0 }
  0x38   :  { %417 = vmatpush3.bf16.msra.mxu1 %v460_v8 }
  0x39   :  { %418 = vmatprep.subr.bf16.mxu1 %v524_v0  ;;  %433 = vmatpush3.bf16.msra.mxu0 %v466_v14 }
  0x3a   :  { %434 = vmatprep.subr.bf16.mxu0 %v524_v0 }
  0x3c   :  { %419 = vmatpush3.bf16.msra.mxu1 %v461_v9 }
  0x3d   :  { %420 = vmatprep.subr.bf16.mxu1 %v524_v0  ;;  %435 = vmatpush3.bf16.msra.mxu0 %v467_v15 }
  0x3e   :  { %436 = vmatprep.subr.bf16.mxu0 %v524_v0 }
  0x40   :  { %421 = vmatpush3.bf16.msra.mxu1 %v462_v10 }
  0x41   :  { %422 = vmatprep.subr.bf16.mxu1 %v524_v0  ;;  %437 = vmatpush3.bf16.msra.mxu0 %v468_v16 }
  0x42   :  { %438 = vmatprep.subr.bf16.mxu0 %v524_v0 }
  0x44   :  { %423 = vmatpush3.bf16.msra.mxu1 %v463_v11 }
  0x45   :  { %439 = vmatpush3.bf16.msra.mxu0 %v469_v17 }
  0x46   :  { %440 = vmatprep.subr.bf16.mxu0 %v524_v0 }
  0x49   :  { %441 = vmatpush3.bf16.msra.mxu0 %v470_v26 }
  0x4a   :  { %442 = vmatprep.subr.bf16.mxu0 %v524_v0 }
  0x4d   :  { %443 = vmatpush3.bf16.msra.mxu0 %v471_v27 }
 0x102   :  { %v117_v19 = vpop.f32.mrb[0].mxu0 }
 0x103   :  { %v118_v20 = vadd.f32 %v357_v18, %v117_v19  ;;  %v406_v21 = vpop.f32.mrb[1].mxu0 }
 0x104   :  { %v120_v22 = vpop.f32.mrb[2].mxu0 }
 0x105   :  { %v123_v23 = vmax.f32 %v118_v20, 0.0  ;;  %v407_v24 = vpop.f32.mrb[3].mxu0 }
 0x107   :  { %v124_v25 = vpack.c.bf16 %v123_v23, %v123_v23 }
 0x109   :  { %425 = vmatmul.mubr.bf16.vlgmr.msra.gmra.mrb[0].mxu1 %v124_v25 }
 0x1dc   :  { %v230_v29 = vpop.f32.mrb[0].mxu1 }
 0x1dd   :  { %v231_v30 = vadd.f32 %v361_v28, %v230_v29  ;;  %v426_v31 = vpop.f32.mrb[1].mxu1 }
 0x1de   :  { %v233_v32 = vpop.f32.mrb[2].mxu1 }
 0x1df   :  { %v236_v33 = vmax.f32 %v231_v30, 0.0  ;;  %v427_v34 = vpop.f32.mrb[3].mxu1 }
 0x1e1   :  { %v237_v35 = vpack.c.bf16 %v236_v33, %v236_v33 }
 0x1e3   :  { %445 = vmatmul.mubr.bf16.vlgmr.msra.gmra.mrb[4].mxu0 %v237_v35 }
 0x2b6   :  { %v343_v37 = vpop.f32.mrb[4].mxu0 }
 0x2b7   :  { %v344_v38 = vadd.f32 %v370_v36, %v343_v37  ;;  %v446_v39 = vpop.f32.mrb[5].mxu0 }
 0x2b8   :  { %v346_v40 = vpop.f32.mrb[6].mxu0 }
 0x2b9   :  { %v349_v41 = vpack.c.bf16 %v344_v38, %v344_v38  ;;  %v447_v42 = vpop.f32.mrb[7].mxu0 }
 0x2bb   :  { %350 = vst [vmem:[%s642_s7] sm:$0xf] %v349_v41 }
 0x2bc   :  { %355 = vsyncpa [#allocation3], 1 }
 0x2bd   :  { %356 = vsyncpa [#allocation5], 1 }

</bundles_post_ra>
